<compile_context>
chip_gen: v7x
topology: tpu7x:2x2x1
jax: 0.10.0
libtpu: 0.0.40
codegen_flags: <defaults>
</compile_context>

<pallas_src>
import functools

import jax
import jax.numpy as jnp
from jax.experimental import pallas as pl
from jax.experimental.pallas import tpu as pltpu

_LANE = 128


# ----------------------------- helpers -------------------------------------

def _round_up(d, m):
    return d + (-d) % m


def _pad2_cast(a, rows, cols, dtype):
    """Zero-pad a 2-D array to (rows, cols) and cast in one fused step."""
    pr, pc = rows - a.shape[0], cols - a.shape[1]
    if pr or pc:
        a = jnp.pad(a, ((0, pr), (0, pc)))
    return a.astype(dtype)


def _pick_tile(dim, prefers):
    """dim is a multiple of 128; prefer the biggest tile that divides it."""
    for t in prefers:
        if dim >= t and dim % t == 0:
            return t
    return _LANE


def _vmem_capacity_bytes():
    """Per-core VMEM capacity, with a conservative (v7x) fallback."""
    try:
        cap = int(pltpu.get_tpu_info().vmem_capacity_bytes)
        if cap > 0:
            return cap
    except Exception:
        pass
    return 64 * 1024 * 1024


# ----------------------------- kernels -------------------------------------

def _fused_gcn_kernel(x_ref, w_ref, b_ref, adj_ref, o_ref, hid_ref, *, use_act):
    """o_tile = act(adj_tile @ hidden), hidden computed once per core."""
    @pl.when(pl.program_id(1) == 0)
    def _():
        # hidden = x @ W + b  (computed once per core into VMEM scratch)
        h = jnp.dot(x_ref[...], w_ref[...], preferred_element_type=jnp.float32)
        h = h + b_ref[...]
        # dropout: identity (inference / training=False)
        hid_ref[...] = h.astype(hid_ref.dtype)

    support = jnp.dot(adj_ref[...], hid_ref[...],
                      preferred_element_type=jnp.float32)
    if use_act:
        support = jnp.maximum(support, 0.0)   # ReLU
    o_ref[...] = support.astype(o_ref.dtype)


def _linear_kernel(x_ref, w_ref, b_ref, o_ref, acc_ref):
    """hidden = x @ w + b; f32 accumulation in scratch, narrow write-out."""
    k = pl.program_id(2)

    @pl.when(k == 0)
    def _():
        acc_ref[...] = jnp.broadcast_to(b_ref[...], acc_ref.shape)

    acc_ref[...] += jnp.dot(x_ref[...], w_ref[...],
                            preferred_element_type=jnp.float32)

    @pl.when(k == pl.num_programs(2) - 1)
    def _():
        o_ref[...] = acc_ref[...].astype(o_ref.dtype)


def _aggregate_kernel(adj_ref, h_ref, o_ref, acc_ref, *, use_act):
    """support = act(adj @ hidden); f32 accumulation in scratch."""
    k = pl.program_id(2)

    @pl.when(k == 0)
    def _():
        acc_ref[...] = jnp.zeros_like(acc_ref)

    acc_ref[...] += jnp.dot(adj_ref[...], h_ref[...],
                            preferred_element_type=jnp.float32)

    @pl.when(k == pl.num_programs(2) - 1)
    def _():
        r = acc_ref[...]
        if use_act:
            r = jnp.maximum(r, 0.0)   # ReLU
        o_ref[...] = r.astype(o_ref.dtype)


# ----------------------------- wrappers ------------------------------------

def _fused_forward(x, adj, w, b, *, use_act, out_dtype, n_splits, tm,
                   vmem_limit):
    Np, Fip = x.shape
    Fop = w.shape[1]
    rows_per_split = (Np // tm) // n_splits
    cd_bytes = jnp.dtype(x.dtype).itemsize
    out_bytes = jnp.dtype(out_dtype).itemsize
    flops = 2 * Np * Fip * Fop + 2 * Np * Np * Fop
    bytes_accessed = ((Np * Fip + Fip * Fop + Np * Np) * cd_bytes
                      + Np * Fop * out_bytes)
    return pl.pallas_call(
        functools.partial(_fused_gcn_kernel, use_act=use_act),
        out_shape=jax.ShapeDtypeStruct((Np, Fop), out_dtype),
        grid_spec=pltpu.PrefetchScalarGridSpec(
            num_scalar_prefetch=0,
            grid=(n_splits, rows_per_split),
            in_specs=[
                pl.BlockSpec((Np, Fip), lambda i, j: (0, 0)),     # full x
                pl.BlockSpec((Fip, Fop), lambda i, j: (0, 0)),    # full W
                pl.BlockSpec((1, Fop), lambda i, j: (0, 0)),      # bias (f32)
                pl.BlockSpec((tm, Np),
                             lambda i, j: (i * rows_per_split + j, 0)),  # adj
            ],
            out_specs=pl.BlockSpec(
                (tm, Fop), lambda i, j: (i * rows_per_split + j, 0)),
            scratch_shapes=[pltpu.VMEM((Np, Fop), x.dtype)],       # hidden
        ),
        compiler_params=pltpu.CompilerParams(
            dimension_semantics=("parallel", "arbitrary"),
            vmem_limit_bytes=vmem_limit),
        cost_estimate=pl.CostEstimate(flops=flops, transcendentals=0,
                                      bytes_accessed=bytes_accessed),
    )(x, w, b, adj)


def _tiled_linear(x, w, b, *, hidden_dtype, tm, tn, tk, vmem_limit):
    Np, Fip = x.shape
    Fop = w.shape[1]
    grid = (Np // tm, Fop // tn, Fip // tk)
    cd_bytes = jnp.dtype(x.dtype).itemsize
    flops = 2 * Np * Fip * Fop
    bytes_accessed = ((Np * Fip + Fip * Fop) * cd_bytes
                      + Np * Fop * jnp.dtype(hidden_dtype).itemsize)
    return pl.pallas_call(
        _linear_kernel,
        out_shape=jax.ShapeDtypeStruct((Np, Fop), hidden_dtype),
        grid_spec=pltpu.PrefetchScalarGridSpec(
            num_scalar_prefetch=0,
            grid=grid,
            in_specs=[
                pl.BlockSpec((tm, tk), lambda i, j, k: (i, k)),   # x
                pl.BlockSpec((tk, tn), lambda i, j, k: (k, j)),   # w
                pl.BlockSpec((1, tn), lambda i, j, k: (0, j)),    # bias
            ],
            out_specs=pl.BlockSpec((tm, tn), lambda i, j, k: (i, j)),
            scratch_shapes=[pltpu.VMEM((tm, tn), jnp.float32)],
        ),
        compiler_params=pltpu.CompilerParams(
            dimension_semantics=("parallel", "parallel", "arbitrary"),
            vmem_limit_bytes=vmem_limit),
        cost_estimate=pl.CostEstimate(flops=flops, transcendentals=0,
                                      bytes_accessed=bytes_accessed),
    )(x, w, b)


def _tiled_aggregate(adj, h, *, use_act, out_dtype, tm, tn, tk, vmem_limit):
    Np = adj.shape[0]
    Fop = h.shape[1]
    grid = (Np // tm, Fop // tn, Np // tk)
    cd_bytes = jnp.dtype(adj.dtype).itemsize
    flops = 2 * Np * Np * Fop
    bytes_accessed = ((Np * Np + Np * Fop) * cd_bytes
                      + Np * Fop * jnp.dtype(out_dtype).itemsize)
    return pl.pallas_call(
        functools.partial(_aggregate_kernel, use_act=use_act),
        out_shape=jax.ShapeDtypeStruct((Np, Fop), out_dtype),
        grid_spec=pltpu.PrefetchScalarGridSpec(
            num_scalar_prefetch=0,
            grid=grid,
            in_specs=[
                pl.BlockSpec((tm, tk), lambda i, j, k: (i, k)),   # adj
                pl.BlockSpec((tk, tn), lambda i, j, k: (k, j)),   # hidden
            ],
            out_specs=pl.BlockSpec((tm, tn), lambda i, j, k: (i, j)),
            scratch_shapes=[pltpu.VMEM((tm, tn), jnp.float32)],
        ),
        compiler_params=pltpu.CompilerParams(
            dimension_semantics=("parallel", "parallel", "arbitrary"),
            vmem_limit_bytes=vmem_limit),
        cost_estimate=pl.CostEstimate(flops=flops, transcendentals=0,
                                      bytes_accessed=bytes_accessed),
    )(adj, h)


def graph_convolution_forward(x, adj, w, b=None, *, use_act=True,
                              compute_dtype=jnp.bfloat16,
                              force_two_pass=False):
    """GCN layer forward: returns (support, adj), matching the PyTorch module.

    Pass compute_dtype=jnp.float32 for exact f32 (PyTorch-parity) numerics;
    the default bf16 keeps f32 accumulation but rounds MXU operands.
    """
    N, F_in = x.shape
    F_out = w.shape[1]
    out_dtype = x.dtype
    if b is None:                      # use_bias=False path
        b = jnp.zeros((F_out,), dtype=jnp.float32)
    b = jnp.reshape(b, (1, F_out)).astype(jnp.float32)

    # Pad to lane multiples so BlockSpecs divide evenly and pre-cast the MXU
    # operands (x, W, adj) to the compute dtype in the same fused step.
    Np = _round_up(N, _LANE)
    Fip = _round_up(F_in, _LANE)
    Fop = _round_up(F_out, _LANE)
    xp = _pad2_cast(x, Np, Fip, compute_dtype)
    adjp = _pad2_cast(adj, Np, Np, compute_dtype)
    wp = _pad2_cast(w, Fip, Fop, compute_dtype)
    bp = _pad2_cast(b, 1, Fop, jnp.float32)

    cap = _vmem_capacity_bytes()
    vmem_limit = int(cap * 0.7)                    # leave ~30% headroom
    small_vmem_chip = cap < 100 * 1024 * 1024      # v7x-class: 2 TCs, 64 MiB

    cd_bytes = jnp.dtype(compute_dtype).itemsize
    out_bytes = jnp.dtype(out_dtype).itemsize

    # ---- fused-path sizing -------------------------------------------------
    n_row_blocks = Np // _LANE
    if small_vmem_chip:
        # keep >=2 row blocks so both TensorCores get work
        tm = 256 if (Np % 256 == 0 and n_row_blocks >= 4) else _LANE
    else:
        # single TC: bigger row tiles amortize per-step overhead
        tm = 256 if Np % 256 == 0 else _LANE
    n_tm_blocks = Np // tm
    n_splits = 2 if (small_vmem_chip and n_tm_blocks >= 2
                     and n_tm_blocks % 2 == 0) else 1

    # Conservative fused VMEM footprint: resident x/W (double-buffered),
    # streamed adj/out tiles (double-buffered), hidden scratch, f32 temps.
    fused_vmem = ((Np * Fip + Fip * Fop) * cd_bytes * 2
                  + (tm * Np * cd_bytes + tm * Fop * out_bytes) * 2
                  + Np * Fop * cd_bytes
                  + (Np * Fop + tm * Fop) * 4)
    fused_ok = (not force_two_pass) and fused_vmem <= int(cap * 0.5)

    if fused_ok:
        support = _fused_forward(xp, adjp, wp, bp, use_act=use_act,
                                 out_dtype=out_dtype, n_splits=n_splits,
                                 tm=tm, vmem_limit=vmem_limit)
    else:
        # Two-pass fallback: hidden lives in HBM (in compute dtype), tiles are
        # generation-tuned (512-ish on 128 MiB chips, 256 on v7x).
        if small_vmem_chip:
            mn_prefs, k_prefs = (256,), (512, 256)
        else:
            mn_prefs, k_prefs = (512, 256), (512, 256)
        tm2 = _pick_tile(Np, mn_prefs)
        tn2 = _pick_tile(Fop, mn_prefs)
        tk_lin = _pick_tile(Fip, k_prefs)
        tk_agg = _pick_tile(Np, k_prefs)
        hidden = _tiled_linear(xp, wp, bp, hidden_dtype=compute_dtype,
                               tm=tm2, tn=tn2, tk=tk_lin,
                               vmem_limit=vmem_limit)
        support = _tiled_aggregate(adjp, hidden, use_act=use_act,
                                   out_dtype=out_dtype, tm=tm2, tn=tn2,
                                   tk=tk_agg, vmem_limit=vmem_limit)

    support = support[:N, :F_out]
    return support, adj


# ------------------------------- main ---------------------------------------

if __name__ == "__main__":
    N = 256          # number of graph nodes
    F_IN = 128       # in_features
    F_OUT = 128      # out_features

    key = jax.random.PRNGKey(0)
    kx, ka, kw, kb = jax.random.split(key, 4)

    x = jax.random.normal(kx, (N, F_IN), dtype=jnp.float32)
    # dense (normalized-ish) adjacency
    adj = jax.random.uniform(ka, (N, N), dtype=jnp.float32) / N

    # deterministic nn.Linear-style init: uniform(-1/sqrt(F_IN), 1/sqrt(F_IN))
    bound = 1.0 / (F_IN ** 0.5)
    w = jax.random.uniform(kw, (F_IN, F_OUT), dtype=jnp.float32,
                           minval=-bound, maxval=bound)
    b = jax.random.uniform(kb, (1, F_OUT), dtype=jnp.float32,
                           minval=-bound, maxval=bound)

    # Fused single-launch path (the one exercised at this problem size).
    support, adj_out = jax.block_until_ready(
        graph_convolution_forward(x, adj, w, b, use_act=True))

    # Two-pass fallback path (used for large graphs) - run once to validate.
    support2, _ = jax.block_until_ready(
        graph_convolution_forward(x, adj, w, b, use_act=True,
                                  force_two_pass=True))

    # Precision-matched reference (bf16 MXU operands, f32 accumulation,
    # bf16 hidden), mirroring the in-kernel numerics exactly.
    cd = jnp.bfloat16
    hidden_ref = (jnp.dot(x.astype(cd), w.astype(cd),
                          preferred_element_type=jnp.float32) + b).astype(cd)
    ref = jnp.maximum(
        jnp.dot(adj.astype(cd), hidden_ref,
                preferred_element_type=jnp.float32), 0.0)
    assert jnp.allclose(support, ref, atol=2e-3, rtol=2e-3), "fused mismatch"
    assert jnp.allclose(support2, ref, atol=2e-3, rtol=2e-3), "two-pass mismatch"

    # Sanity vs. exact f32 PyTorch semantics (loose: bf16 operand rounding).
    ref32 = jnp.maximum(adj @ (x @ w + b), 0.0)
    assert jnp.allclose(support, ref32, atol=1e-2, rtol=5e-2), "f32 sanity mismatch"
    assert adj_out.shape == adj.shape

    print("KERNEL_OK")
</pallas_src>

<mosaic_0001>
module attributes {stable_mosaic.version = 11 : i64} {
  func.func @_fused_gcn_kernel(%arg0: i32, %arg1: i32, %arg2: memref<256x128xbf16, #tpu.memory_space<vmem>>, %arg3: memref<128x128xbf16, #tpu.memory_space<vmem>>, %arg4: memref<1x128xf32, #tpu.memory_space<vmem>>, %arg5: memref<128x256xbf16, #tpu.memory_space<vmem>>, %arg6: memref<128x128xf32, #tpu.memory_space<vmem>>, %arg7: memref<256x128xbf16, #tpu.memory_space<vmem>>) attributes {dimension_semantics = [#tpu.dimension_semantics<parallel>, #tpu.dimension_semantics<arbitrary>], iteration_bounds = array<i64: 2, 1>, scalar_prefetch = 0 : i64, scratch_operands = 1 : i64, tpu.core_type = #tpu.core_type<tc>, window_params = [{pipeline_mode = #tpu.pipeline_mode<synchronous>, transform_indices = @transform_0, window_bounds = array<i64: 256, 128>}, {pipeline_mode = #tpu.pipeline_mode<synchronous>, transform_indices = @transform_1, window_bounds = array<i64: 128, 128>}, {pipeline_mode = #tpu.pipeline_mode<synchronous>, transform_indices = @transform_2, window_bounds = array<i64: 1, 128>}, {transform_indices = @transform_3, window_bounds = array<i64: 128, 256>}, {transform_indices = @transform_4, window_bounds = array<i64: 128, 128>}]} {
    %c0_i32 = arith.constant 0 : i32
    %0 = arith.cmpi eq, %arg1, %c0_i32 : i32
    %1 = arith.extui %0 : i1 to i32
    %c0_i32_0 = arith.constant 0 : i32
    %2 = arith.cmpi ne, %1, %c0_i32_0 : i32
    scf.if %2 {
      %c0_7 = arith.constant 0 : index
      %c0_8 = arith.constant 0 : index
      %9 = vector.load %arg2[%c0_7, %c0_8] : memref<256x128xbf16, #tpu.memory_space<vmem>>, vector<256x128xbf16>
      %c0_9 = arith.constant 0 : index
      %c0_10 = arith.constant 0 : index
      %10 = vector.load %arg3[%c0_9, %c0_10] : memref<128x128xbf16, #tpu.memory_space<vmem>>, vector<128x128xbf16>
      %cst_11 = arith.constant dense<0.000000e+00> : vector<256x128xf32>
      %11 = tpu.matmul %9, %10, %cst_11 {dimension_numbers = #tpu.dot_dimension_numbers<[1], [0], [0], [1], [0, 0, 1, 1], [], []>} : vector<256x128xbf16>, vector<128x128xbf16>, vector<256x128xf32> -> vector<256x128xf32>
      %c0_12 = arith.constant 0 : index
      %c0_13 = arith.constant 0 : index
      %12 = vector.load %arg4[%c0_12, %c0_13] : memref<1x128xf32, #tpu.memory_space<vmem>>, vector<1x128xf32>
      %13 = vector.broadcast %12 : vector<1x128xf32> to vector<256x128xf32>
      %14 = arith.addf %11, %13 : vector<256x128xf32>
      %15 = arith.truncf %14 : vector<256x128xf32> to vector<256x128xbf16>
      %c0_14 = arith.constant 0 : index
      %c0_15 = arith.constant 0 : index
      %16 = vector.load %arg7[%c0_14, %c0_15] : memref<256x128xbf16, #tpu.memory_space<vmem>>, vector<256x128xbf16>
      tpu.vector_store %arg7[%c0_14, %c0_15], %15 {strides = array<i32>} : memref<256x128xbf16, #tpu.memory_space<vmem>>, vector<256x128xbf16>,
    } else {
    }
    %c0 = arith.constant 0 : index
    %c0_1 = arith.constant 0 : index
    %3 = vector.load %arg5[%c0, %c0_1] : memref<128x256xbf16, #tpu.memory_space<vmem>>, vector<128x256xbf16>
    %c0_2 = arith.constant 0 : index
    %c0_3 = arith.constant 0 : index
    %4 = vector.load %arg7[%c0_2, %c0_3] : memref<256x128xbf16, #tpu.memory_space<vmem>>, vector<256x128xbf16>
    %cst = arith.constant dense<0.000000e+00> : vector<128x128xf32>
    %5 = tpu.matmul %3, %4, %cst {dimension_numbers = #tpu.dot_dimension_numbers<[1], [0], [0], [1], [0, 0, 1, 1], [], []>} : vector<128x256xbf16>, vector<256x128xbf16>, vector<128x128xf32> -> vector<128x128xf32>
    %cst_4 = arith.constant 0.000000e+00 : f32
    %6 = vector.broadcast %cst_4 : f32 to vector<128x128xf32>
    %7 = arith.maximumf %5, %6 : vector<128x128xf32>
    %c0_5 = arith.constant 0 : index
    %c0_6 = arith.constant 0 : index
    %8 = vector.load %arg6[%c0_5, %c0_6] : memref<128x128xf32, #tpu.memory_space<vmem>>, vector<128x128xf32>
    tpu.vector_store %arg6[%c0_5, %c0_6], %7 {strides = array<i32>} : memref<128x128xf32, #tpu.memory_space<vmem>>, vector<128x128xf32>,
    return
  }
  func.func @transform_0(%arg0: i32, %arg1: i32) -> (i32, i32) {
    %c0_i32 = arith.constant 0 : i32
    %c0_i32_0 = arith.constant 0 : i32
    %c0_i32_1 = arith.constant 0 : i32
    return %c0_i32, %c0_i32_0 : i32, i32
  }
  func.func @transform_1(%arg0: i32, %arg1: i32) -> (i32, i32) {
    %c0_i32 = arith.constant 0 : i32
    %c0_i32_0 = arith.constant 0 : i32
    %c0_i32_1 = arith.constant 0 : i32
    return %c0_i32, %c0_i32_0 : i32, i32
  }
  func.func @transform_2(%arg0: i32, %arg1: i32) -> (i32, i32) {
    %c0_i32 = arith.constant 0 : i32
    %c0_i32_0 = arith.constant 0 : i32
    %c0_i32_1 = arith.constant 0 : i32
    return %c0_i32, %c0_i32_0 : i32, i32
  }
  func.func @transform_3(%arg0: i32, %arg1: i32) -> (i32, i32) {
    %c1_i32 = arith.constant 1 : i32
    %0 = arith.muli %arg0, %c1_i32 : i32
    %1 = arith.addi %0, %arg1 : i32
    %c0_i32 = arith.constant 0 : i32
    %c0_i32_0 = arith.constant 0 : i32
    return %1, %c0_i32 : i32, i32
  }
  func.func @transform_4(%arg0: i32, %arg1: i32) -> (i32, i32) {
    %c1_i32 = arith.constant 1 : i32
    %0 = arith.muli %arg0, %c1_i32 : i32
    %1 = arith.addi %0, %arg1 : i32
    %c0_i32 = arith.constant 0 : i32
    %c0_i32_0 = arith.constant 0 : i32
    return %1, %c0_i32 : i32, i32
  }
}

</mosaic_0001>

<bundles_post_ra>
// kernel: tpu_custom_call.1
= control target key start
LH: loop header
LB: loop body
LE: loop exit
PB: predicated region body
PF: predicated region fallthrough
CT: control target
= control target key end

     0   :  { %9 = vsyncpa [#allocation4], 0  ;;  %s1919_s0 = inlined_call_operand.hbm [shape: bf16[256,128], index: 0, kind: input, shape index: {}]   ;;  %s1920_s1 = inlined_call_operand.hbm [shape: bf16[128,128], index: 1, kind: input, shape index: {}]   ;;  %s1921_s2 = inlined_call_operand.vmem [shape: f32[1,128], index: 2, kind: input, shape index: {}]   ;;  %s1922_s3 = inlined_call_operand.hbm [shape: bf16[256,256], index: 3, kind: input, shape index: {}]   ;;  %s1923_s4 = inlined_call_operand.hbm [shape: f32[256,128], index: 4, kind: output, shape index: {}]  }
   0x1   :  { %10 = vsyncpa [#allocation7], 0 }
   0x2   :  { %11 = vsyncpa [#allocation5], 0 }
   0x3   :  { %13 = vsyncpa [#allocation5 + $0x1], 0  ;;  %s1570_s15 = smov 0   ;;  %s1572_s16 = smov 0  }
   0x4   :  { %s1574_s17 = smov 0   ;;  %s1576_s18 = smov 0  }
   0x5   :  { %s1578_s19 = smov 0   ;;  %s1580_s20 = smov 0  }
   0x6 LB: > { %s1601_s21 = sadd.s32 4294967295, %s1533_s20   ;;  %s1021_s22 = sadd.s32 4294967294, %s1533_s20   ;;  %s1533_s20 = sphi %s1580_s20, %s19_s20   ;;  %s1529_s19 = sphi %s1578_s19, %s1946_s19   ;;  %s1525_s18 = sphi %s1576_s18, %s1945_s18   ;;  %s1521_s17 = sphi %s1574_s17, %s1944_s17   ;;  %s1517_s16 = sphi %s1572_s16, %s1943_s16   ;;  %s1513_s15 = sphi %s1570_s15, %s1942_s15  }
   0x7   : > { %p110_p0 = scmp.ne.s32.totalorder %s1521_s17, %s1517_s16  ;;  %p111_p1 = scmp.eq.s32.totalorder %s1533_s20, 0 }
   0x8   : > { %p116_p2 = scmp.ne.s32.totalorder %s1517_s16, %s1513_s15  ;;  %p1924_p3 = scmp.eq.s32.totalorder %s1601_s21, 0 }
   0x9   : > { %p1610_p4 = por %p111_p1, %p110_p0  ;;  %p142_p5 = scmp.eq.s32.totalorder %s1601_s21, 1 }
   0xa   : > { %p1617_p6 = por %p1924_p3, %p116_p2  ;;  %p148_p7 = scmp.eq.s32.totalorder %s1021_s22, 1 }
   0xb   : > { %p1621_p8 = por %p142_p5, %p110_p0  ;;  %p1022_p9 = scmp.ge.s32.totalorder %s1533_s20, 1 }
   0xc   : > { %s1928_s24 = scalar_select %p1617_p6, 1, 0 }
   0xd   : > { %s1929_s25 = scalar_select %p1621_p8, 1, 0 }
   0xe   : > { %p1626_p10 = por %p148_p7, %p116_p2  ;;  %p155_p11 = scmp.lt.s32.totalorder %s1533_s20, 3 }
   0xf   : > { %s1535_s28 = smov [#allocation3]   ;;  %p1249_p1 = scmp.lt.s32.totalorder %s1533_s20, 2 }
  0x10   : > { %s1930_s26 = scalar_select %p1626_p10, 1, 0 }
  0x11   : > { %p1631_p12 = pnand %p1022_p9, %p155_p11  ;;  %s167_s29 = sshll.u32 %s1535_s28, 4  ;;  %s1635_s29 = int_to_ptr.vmem [resolvable:$true] %s167_s29 }
  0x12   : > { %p1649_p2 = pnand %p1249_p1, %p1610_p4  ;;  %s1536_s6 = smov [#allocation6]  }
  0x13   : > { %p1232_p13 = pneg %p1631_p12  ;;  %s180_s7 = sshll.u32 %s1536_s6, 4  ;;  %s1653_s7 = int_to_ptr.vmem [resolvable:$true] %s180_s7 }
  0x14   : > { %s1357_s10 = scalar_lea.hbm %s1919_s0, 2048 }
  0x15   : > { %p1643_p5 = pnand %p1232_p13, %p1924_p3  ;;  %p1358_p7 = scmp.ne.s32.totalorder %s1919_s0, %s1357_s10 }
  0x16   : > { %p1364_p13 = scmp.lt.u32.totalorder %s1357_s10, %s1919_s0 }
  0x17   : > { %p1359_p9 = pneg %p1643_p5 }
  0x19   : > { %p1360_p4 = pnand %p1359_p9, %p1358_p7 }
  0x1b   : > { %p1361_p11 = pneg %p1360_p4 }
  0x1d   : > { %p1366_p1 = pnand %p1364_p13, %p1361_p11 }
  0x1f   : > { %1369 = shalt.err (!%p1366_p1)
}
  0x20   : > { %s1370_s22 = scalar_lea.vmem %s1635_s29, 2048  ;;  %p1378_p8 = scmp.lt.s32.totalorder %s1635_s29, %s1635_s29 }
  0x21   : > { %p1371_p0 = scmp.ne.s32.totalorder %s1635_s29, %s1370_s22  ;;  %p1379_p7 = scmp.lt.s32.totalorder %s1370_s22, %s1370_s22 }
  0x23   : > { %p1373_p3 = pnand %p1371_p0, %p1359_p9  ;;  %p1380_p4 = por %p1379_p7, %p1378_p8 }
  0x25   : > { %p1374_p10 = pneg %p1373_p3 }
  0x27   : > { %p1381_p6 = pnand %p1380_p4, %p1374_p10 }
  0x29   : > { %1384 = shalt.err (!%p1381_p6)
}
  0x2a   : > { %s1537_s23 = smov 64   ;;  %s1538_s28 = smov 4  }
  0x2b   : > { %1235 = dma.hbm_to_vmem [thread:$0]  (!%p1643_p5), %s1919_s0, 2048, %s1635_s29, [#allocation4], %s1537_s23, %s1537_s23, %s1538_s28  }
  0x2c   : > { %s1385_s11 = scalar_lea.hbm %s1920_s1, 1024 }
  0x2d   : > { %p1386_p3 = scmp.ne.s32.totalorder %s1920_s1, %s1385_s11  ;;  %p1392_p10 = scmp.lt.u32.totalorder %s1385_s11, %s1920_s1 }
  0x2f   : > { %p1388_p6 = pnand %p1386_p3, %p1359_p9 }
  0x31   : > { %p1389_p8 = pneg %p1388_p6 }
  0x33   : > { %p1394_p0 = pnand %p1392_p10, %p1389_p8 }
  0x35   : > { %1397 = shalt.err (!%p1394_p0)
}
  0x36   : > { %s1398_s29 = scalar_lea.vmem %s1653_s7, 1024  ;;  %p1406_p7 = scmp.lt.s32.totalorder %s1653_s7, %s1653_s7 }
  0x37   : > { %p1399_p11 = scmp.ne.s32.totalorder %s1653_s7, %s1398_s29  ;;  %p1407_p4 = scmp.lt.s32.totalorder %s1398_s29, %s1398_s29 }
  0x39   : > { %p1401_p13 = pnand %p1399_p11, %p1359_p9  ;;  %p1408_p3 = por %p1407_p4, %p1406_p7 }
  0x3b   : > { %p1402_p1 = pneg %p1401_p13 }
  0x3d   : > { %p1409_p6 = pnand %p1408_p3, %p1402_p1 }
  0x3f   : > { %1412 = shalt.err (!%p1409_p6)
}
  0x40   : > { %1238 = dma.hbm_to_vmem [thread:$0]  (!%p1643_p5), %s1920_s1, 1024, %s1653_s7, [#allocation7], %s1537_s23, %s1537_s23, %s1538_s28  }
  0x41   : > { %s103_s9 = sadd.s32 1, %s1521_s17  ;;  %s31_s10 = sadd.s32 1, %s1529_s19 }
  0x42   : > { %s197_s11 = sand.u32 1, %s1533_s20   ;;  %p33_p9 = scmp.ge.s32.totalorder %s31_s10, 2 }
  0x43   : > { %s199_s12 = sand.u32 1, %s1521_s17   ;;  %s1082_s30 = sshll.u32 %s1529_s19, 11 }
  0x44   : > { %s1948_s10 = smov (%p33_p9, %s31_s10), 0  ;;  %s1026_s13 = sshll.u32 %s199_s12, 7 }
  0x45   : > { %s1717_s29 = scalar_lea.hbm %s1922_s3, %s1082_s30  ;;  %s100_s7 = ssub.s32 %s1529_s19, %s1948_s10 }
  0x46   : > { %p101_p5 = scmp.eq.s32.totalorder %s100_s7, 0  ;;  %s201_s23 = scalar_lea.vmem [#allocation8], %s1026_s13 }
  0x47   : > { %s210_s28 = sshll.u32 %s201_s23, 4  ;;  %s1726_s8 = scalar_lea.sflag [#allocation4], %s197_s11  ;;  %s1721_s28 = int_to_ptr.vmem [resolvable:$true] %s210_s28 }
  0x48   : > { %s1724_s6 = scalar_select %p101_p5, %s1521_s17, %s103_s9  }
  0x49   : > { %s1413_s12 = scalar_lea.hbm %s1717_s29, 2048  ;;  %p1415_p10 = pneg %p1649_p2 }
  0x4a   : > { %p1414_p8 = scmp.ne.s32.totalorder %s1717_s29, %s1413_s12  ;;  %s1418_s22 = scalar_lea.hbm %s1922_s3, 4096 }
  0x4b   : > { %p1419_p13 = scmp.lt.u32.totalorder %s1717_s29, %s1922_s3  ;;  %p1420_p1 = scmp.lt.u32.totalorder %s1418_s22, %s1413_s12 }
  0x4c   : > { %p1416_p0 = pnand %p1415_p10, %p1414_p8  ;;  %p1422_p4 = scmp.lt.u32.totalorder %s1413_s12, %s1717_s29 }
  0x4d   : > { %p1421_p7 = por %p1420_p1, %p1419_p13 }
  0x4e   : > { %p1417_p11 = pneg %p1416_p0 }
  0x4f   : > { %p1423_p3 = por %p1422_p4, %p1421_p7 }
  0x51   : > { %p1424_p6 = pnand %p1423_p3, %p1417_p11 }
  0x53   : > { %1427 = shalt.err (!%p1424_p6)
}
  0x54   : > { %s1428_s9 = scalar_lea.vmem %s1721_s28, 2048  ;;  %s1539_s11 = smov [#allocation8]  }
  0x55   : > { %p1429_p9 = scmp.ne.s32.totalorder %s1721_s28, %s1428_s9  ;;  %s1433_s23 = sshll.u32 %s1539_s11, 4  ;;  %s1434_s23 = int_to_ptr.vmem [resolvable:$false] %s1433_s23 }
  0x56   : > { %s1435_s30 = scalar_lea.vmem %s1434_s23, 4096  ;;  %p1436_p0 = scmp.lt.s32.totalorder %s1721_s28, %s1434_s23 }
  0x57   : > { %p1431_p5 = pnand %p1429_p9, %p1415_p10  ;;  %p1437_p13 = scmp.lt.s32.totalorder %s1435_s30, %s1428_s9 }
  0x59   : > { %p1432_p8 = pneg %p1431_p5  ;;  %p1438_p1 = por %p1437_p13, %p1436_p0 }
  0x5b   : > { %p1439_p7 = pnand %p1438_p1, %p1432_p8 }
  0x5d   : > { %1442 = shalt.err (!%p1439_p7)
}
  0x5e   : > { %s1540_s12 = smov 128   ;;  %s1541_s14 = smov 8  }
  0x5f   : > { %1242 = dma.hbm_to_vmem [thread:$0]  (!%p1649_p2), %s1717_s29, 2048, %s1721_s28, %s1726_s8, %s1540_s12, %s1540_s12, %s1541_s14  }
  0x60   : > { %222 = sbr.rel (%p1631_p12) target bundleno = 718 (0x2ce), region = 36  ;;  %p1934_p10 = scmp.eq.s32.totalorder (!%p1631_p12), %s1601_s21, 0 }
  0x67   : > { %1496 = dma.done.wait (%p1934_p10), [#allocation4], 2048   ;;  %p1935_p11 = pmov %p1934_p10 }
  0x68   : > { %p1936_p4 = pmov %p1934_p10 }
  0x69   : > { %1498 = vsyncadd (%p1935_p11), [#allocation4], 4294965248 }
  0x6a   : > { %1500 = dma.done.wait (%p1936_p4), [#allocation7], 1024   ;;  %p1937_p3 = pmov %p1936_p4 }
  0x6b   : > { %s232_s5 = sand.u32 1, %s1601_s21   ;;  %s234_s29 = sand.u32 1, %s1517_s16  }
  0x6c   : > { %1502 = vsyncadd (%p1937_p3), [#allocation7], 4294966272  ;;  %s1768_s27 = sshll.u32 %s234_s29, 7  ;;  %s233_s28 = scalar_lea.sflag [#allocation4], %s232_s5 }
  0x6d   : > { %s1771_s8 = scalar_lea.vmem [#allocation8], %s1768_s27  ;;  %p1938_p12 = scmp.ne.s32.totalorder %s1928_s24, 0 }
  0x6f   : > { %1504 = dma.done.wait (%p1938_p12), %s233_s28, 2048  }
  0x70   : > { %1506 = vsyncadd (%p1938_p12), %s233_s28, 4294965248  ;;  %v1309_v0 = vld [vmem:[#allocation6] sm:$0xff]   ;;  %v1310_v1 = vld [vmem:[#allocation6 + $0x8] sm:$0xff]   ;;  %s1843_s22 = scalar_lea.vmem [#allocation9], %s1768_s27  ;;  %s1083_s13 = sshll.u32 %s1525_s18, 11 }
  0x71   : > { %1172 = vmatprep.subr.bf16.mxu0 %v1309_v0  ;;  %v1311_v2 = vld [vmem:[#allocation6 + $0x10] sm:$0xff]   ;;  %v1312_v3 = vld [vmem:[#allocation6 + $0x18] sm:$0xff]   ;;  %v1317_v4 = vld [vmem:[#allocation3] sm:$0xff]   ;;  %s918_s7 = sshll.u32 %s1843_s22, 4  ;;  %s1864_s23 = scalar_lea.hbm %s1923_s4, %s1083_s13  ;;  %s1866_s7 = int_to_ptr.vmem [resolvable:$true] %s918_s7 }
  0x72   : > { %1173 = vmatpush3.bf16.msra.mxu0 %v1309_v0  ;;  %1188 = vmatprep.mubr.bf16.mxu0 %v1317_v4  ;;  %v1313_v5 = vld [vmem:[#allocation6 + $0x20] sm:$0xff]   ;;  %v1314_v6 = vld [vmem:[#allocation6 + $0x28] sm:$0xff]   ;;  %v1315_v7 = vld [vmem:[#allocation6 + $0x30] sm:$0xff]   ;;  %s1872_s30 = scalar_lea.sflag [#allocation5], %s234_s29  ;;  %s1443_s18 = scalar_lea.vmem %s1866_s7, 2048 }
  0x73   : > { %1174 = vmatprep.subr.bf16.mxu0 %v1310_v1  ;;  %v1316_v8 = vld [vmem:[#allocation6 + $0x38] sm:$0xff]   ;;  %v1318_v9 = vld [vmem:[#allocation3 + $0x8] sm:$0xff]   ;;  %v1319_v10 = vld [vmem:[#allocation3 + $0x10] sm:$0xff]   ;;  %p1444_p2 = scmp.ne.s32.totalorder %s1866_s7, %s1443_s18  ;;  %p1939_p6 = scmp.ne.s32.totalorder %s1929_s25, 0 }
  0x74   : > { %v1320_v11 = vld [vmem:[#allocation3 + $0x18] sm:$0xff]   ;;  %v1321_v12 = vld [vmem:[#allocation3 + $0x20] sm:$0xff]   ;;  %v1322_v13 = vld [vmem:[#allocation3 + $0x28] sm:$0xff]   ;;  %s1542_s12 = smov [#allocation9]  }
  0x75   : > { %v1323_v14 = vld [vmem:[#allocation3 + $0x30] sm:$0xff]   ;;  %v1324_v15 = vld [vmem:[#allocation3 + $0x38] sm:$0xff]   ;;  %v1325_v16 = vld [vmem:[#allocation3 + $0x40] sm:$0xff]   ;;  %p1445_p9 = pnand %p1444_p2, %p1939_p6  ;;  %s1447_s14 = sshll.u32 %s1542_s12, 4  ;;  %s1448_s14 = int_to_ptr.vmem [resolvable:$false] %s1447_s14 }
  0x76   : > { %1175 = vmatpush3.bf16.msra.mxu0 %v1310_v1  ;;  %v1326_v17 = vld [vmem:[#allocation3 + $0x48] sm:$0xff]   ;;  %v1327_v18 = vld [vmem:[#allocation3 + $0x50] sm:$0xff]   ;;  %v1328_v19 = vld [vmem:[#allocation3 + $0x58] sm:$0xff]   ;;  %s1449_s5 = scalar_lea.vmem %s1448_s14, 4096  ;;  %p1450_p8 = scmp.lt.s32.totalorder %s1866_s7, %s1448_s14 }
  0x77   : > { %1176 = vmatprep.subr.bf16.mxu0 %v1311_v2  ;;  %v1329_v20 = vld [vmem:[#allocation3 + $0x60] sm:$0xff]   ;;  %v1330_v21 = vld [vmem:[#allocation3 + $0x68] sm:$0xff]   ;;  %v1331_v22 = vld [vmem:[#allocation3 + $0x70] sm:$0xff]   ;;  %p1446_p5 = pneg %p1445_p9  ;;  %p1451_p0 = scmp.lt.s32.totalorder %s1449_s5, %s1443_s18 }
  0x78   : > { %v1332_v23 = vld [vmem:[#allocation3 + $0x78] sm:$0xff]   ;;  %v1335_v24 = vld [vmem:[%s1771_s8 + $0x4] ss:$8 sps:$4 sm:$0xff]   ;;  %v1781_v26 = vld [vmem:[%s1921_s2] ss:$0 sm:$0xff] }
  0x79   : > { %806 = vmatprep.mubr.bf16.mxu1 %v1335_v24  ;;  %p1452_p13 = por %p1451_p0, %p1450_p8 }
  0x7a   : > { %1177 = vmatpush3.bf16.msra.mxu0 %v1311_v2 }
  0x7b   : > { %1178 = vmatprep.subr.bf16.mxu0 %v1312_v3  ;;  %p1453_p1 = pnand %p1452_p13, %p1446_p5 }
  0x7e   : > { %1179 = vmatpush3.bf16.msra.mxu0 %v1312_v3 }
  0x7f   : > { %1180 = vmatprep.subr.bf16.mxu0 %v1313_v5 }
  0x82   : > { %1181 = vmatpush3.bf16.msra.mxu0 %v1313_v5 }
  0x83   : > { %1182 = vmatprep.subr.bf16.mxu0 %v1314_v6 }
  0x86   : > { %1183 = vmatpush3.bf16.msra.mxu0 %v1314_v6 }
  0x87   : > { %1184 = vmatprep.subr.bf16.mxu0 %v1315_v7 }
  0x8a   : > { %1185 = vmatpush3.bf16.msra.mxu0 %v1315_v7 }
  0x8b   : > { %1186 = vmatprep.subr.bf16.mxu0 %v1316_v8 }
  0x8e   : > { %1187 = vmatpush3.bf16.msra.mxu0 %v1316_v8 }
  0x91   : > { %1189 = vmatmul.mubr.bf16.vlgmr.msra.gmra.mrb[0].mxu0 %v1318_v9 }
  0x92   : > { %1192 = vmatprep.mubr.bf16.mxu0 %v1319_v10 }
  0x99   : > { %1193 = vmatmul.mubr.bf16.gmra.mrb[4].mxu0 %v1320_v11 }
  0x9a   : > { %1196 = vmatprep.mubr.bf16.mxu0 %v1321_v12 }
  0xa1   : > { %1197 = vmatmul.mubr.bf16.gmra.mrb[8].mxu0 %v1322_v13 }
  0xa2   : > { %1200 = vmatprep.mubr.bf16.mxu0 %v1323_v14 }
  0xa9   : > { %1201 = vmatmul.mubr.bf16.gmra.mrb[12].mxu0 %v1324_v15 }
  0xaa   : > { %1204 = vmatprep.mubr.bf16.mxu0 %v1325_v16 }
  0xb1   : > { %1205 = vmatmul.mubr.bf16.gmra.mrb[16].mxu0 %v1326_v17 }
  0xb2   : > { %1208 = vmatprep.mubr.bf16.mxu0 %v1327_v18 }
  0xb9   : > { %1209 = vmatmul.mubr.bf16.gmra.mrb[20].mxu0 %v1328_v19 }
  0xba   : > { %1212 = vmatprep.mubr.bf16.mxu0 %v1329_v20 }
  0xc1   : > { %1213 = vmatmul.mubr.bf16.gmra.mrb[24].mxu0 %v1330_v21 }
  0xc2   : > { %1216 = vmatprep.mubr.bf16.mxu0 %v1331_v22 }
  0xc9   : > { %1217 = vmatmul.mubr.bf16.gmra.mrb[28].mxu0 %v1332_v23 }
 0x164   : > { %v1190_v25 = vpop.f32.mrb[0].mxu0 }
 0x165   : > { %v503_v27 = vpop.f32.mrb[1].mxu0  ;;  %v512_v29 = vadd.f32 %v1190_v25, %v1781_v26 }
 0x166   : > { %v1191_v28 = vpop.f32.mrb[2].mxu0  ;;  %v504_v32 = vadd.f32 %v1781_v26, %v503_v27 }
 0x167   : > { %v515_v30 = vadd.f32 %v1191_v28, %v1781_v26  ;;  %v506_v31 = vpop.f32.mrb[3].mxu0 }
 0x168   : > { %v507_v33 = vadd.f32 %v1781_v26, %v506_v31 }
 0x169   : > { %v631_v34 = vpack.c.bf16 %v515_v30, %v512_v29 }
 0x16a   : > { %v630_v35 = vpack.c.bf16 %v507_v33, %v504_v32 }
 0x16c   : > { %v1194_v36 = vpop.f32.mrb[4].mxu0 }
 0x16d   : > { %v519_v37 = vpop.f32.mrb[5].mxu0  ;;  %v1788_v39 = vadd.f32 %v1194_v36, %v1781_v26 }
 0x16e   : > { %v1195_v38 = vpop.f32.mrb[6].mxu0  ;;  %v520_v42 = vadd.f32 %v1781_v26, %v519_v37 }
 0x16f   : > { %v531_v40 = vadd.f32 %v1195_v38, %v1781_v26  ;;  %v522_v41 = vpop.f32.mrb[7].mxu0 }
 0x170   : > { %v523_v43 = vadd.f32 %v1781_v26, %v522_v41 }
 0x171   : > { %v633_v44 = vpack.c.bf16 %v531_v40, %v1788_v39 }
 0x172   : > { %v632_v45 = vpack.c.bf16 %v523_v43, %v520_v42  ;;  %v1333_v43 = vld [vmem:[%s1771_s8] ss:$8 sps:$4 sm:$0xff]  }
 0x174   : > { %v1198_v46 = vpop.f32.mrb[8].mxu0 }
 0x175   : > { %v535_v47 = vpop.f32.mrb[9].mxu0  ;;  %v1795_v49 = vadd.f32 %v1198_v46, %v1781_v26  ;;  %v1341_v46 = vld [vmem:[%s1771_s8 + $0x20] ss:$8 sps:$4 sm:$0xff]  }
 0x176   : > { %v1199_v48 = vpop.f32.mrb[10].mxu0  ;;  %v536_v52 = vadd.f32 %v1781_v26, %v535_v47  ;;  %v1342_v47 = vld [vmem:[%s1771_s8 + $0x34] ss:$8 sps:$4 sm:$0xff]  }
 0x177   : > { %v1798_v50 = vadd.f32 %v1199_v48, %v1781_v26  ;;  %v538_v51 = vpop.f32.mrb[11].mxu0  ;;  %v1344_v48 = vld [vmem:[%s1771_s8 + $0x30] ss:$8 sps:$4 sm:$0xff]  }
 0x178   : > { %v539_v53 = vadd.f32 %v1781_v26, %v538_v51  ;;  %v1348_v51 = vld [vmem:[%s1771_s8 + $0x54] ss:$8 sps:$4 sm:$0xff]  }
 0x179   : > { %v635_v54 = vpack.c.bf16 %v1798_v50, %v1795_v49  ;;  %v1345_v49 = vld [vmem:[%s1771_s8 + $0x44] ss:$8 sps:$4 sm:$0xff]   ;;  %v1347_v50 = vld [vmem:[%s1771_s8 + $0x40] ss:$8 sps:$4 sm:$0xff]  }
 0x17a   : > { %v634_v55 = vpack.c.bf16 %v539_v53, %v536_v52  ;;  %v1350_v52 = vld [vmem:[%s1771_s8 + $0x50] ss:$8 sps:$4 sm:$0xff]   ;;  %v1351_v53 = vld [vmem:[%s1771_s8 + $0x64] ss:$8 sps:$4 sm:$0xff]  }
 0x17c   : > { %v1202_v56 = vpop.f32.mrb[12].mxu0 }
 0x17d   : > { %v551_v57 = vpop.f32.mrb[13].mxu0  ;;  %v1805_v59 = vadd.f32 %v1202_v56, %v1781_v26  ;;  %v1356_v56 = vld [vmem:[%s1771_s8 + $0x70] ss:$8 sps:$4 sm:$0xff]  }
 0x17e   : > { %v1203_v58 = vpop.f32.mrb[14].mxu0  ;;  %v552_v62 = vadd.f32 %v1781_v26, %v551_v57 }
 0x17f   : > { %v563_v60 = vadd.f32 %v1203_v58, %v1781_v26  ;;  %v554_v61 = vpop.f32.mrb[15].mxu0 }
 0x180   : > { %v555_v63 = vadd.f32 %v1781_v26, %v554_v61 }
 0x181   : > { %v637_v0 = vpack.c.bf16 %v563_v60, %v1805_v59 }
 0x182   : > { %v636_v1 = vpack.c.bf16 %v555_v63, %v552_v62 }
 0x184   : > { %v1206_v2 = vpop.f32.mrb[16].mxu0 }
 0x185   : > { %v567_v3 = vpop.f32.mrb[17].mxu0  ;;  %v576_v5 = vadd.f32 %v1206_v2, %v1781_v26 }
 0x186   : > { %v1207_v4 = vpop.f32.mrb[18].mxu0  ;;  %v568_v8 = vadd.f32 %v1781_v26, %v567_v3 }
 0x187   : > { %v579_v6 = vadd.f32 %v1207_v4, %v1781_v26  ;;  %v570_v7 = vpop.f32.mrb[19].mxu0 }
 0x188   : > { %v571_v9 = vadd.f32 %v1781_v26, %v570_v7 }
 0x189   : > { %v639_v10 = vpack.c.bf16 %v579_v6, %v576_v5 }
 0x18a   : > { %v638_v11 = vpack.c.bf16 %v571_v9, %v568_v8 }
 0x18c   : > { %v1210_v12 = vpop.f32.mrb[20].mxu0  ;;  %1108 = vmatprep.subr.bf16.mxu1 %v638_v11 }
 0x18d   : > { %v583_v13 = vpop.f32.mrb[21].mxu0  ;;  %1109 = vmatpush3.bf16.msra.mxu1 %v630_v35  ;;  %v592_v15 = vadd.f32 %v1210_v12, %v1781_v26 }
 0x18e   : > { %v1211_v14 = vpop.f32.mrb[22].mxu0  ;;  %1110 = vmatprep.subr.bf16.mxu1 %v639_v10  ;;  %v584_v18 = vadd.f32 %v1781_v26, %v583_v13 }
 0x18f   : > { %v595_v16 = vadd.f32 %v1211_v14, %v1781_v26  ;;  %v586_v17 = vpop.f32.mrb[23].mxu0 }
 0x190   : > { %v587_v19 = vadd.f32 %v1781_v26, %v586_v17 }
 0x191   : > { %v641_v20 = vpack.c.bf16 %v595_v16, %v592_v15  ;;  %1111 = vmatpush3.bf16.msra.mxu1 %v631_v34 }
 0x192   : > { %v640_v21 = vpack.c.bf16 %v587_v19, %v584_v18 }
 0x194   : > { %v1214_v22 = vpop.f32.mrb[24].mxu0  ;;  %1112 = vmatprep.subr.bf16.mxu1 %v640_v21 }
 0x195   : > { %v599_v23 = vpop.f32.mrb[25].mxu0  ;;  %1113 = vmatpush3.bf16.msra.mxu1 %v632_v45  ;;  %v608_v25 = vadd.f32 %v1214_v22, %v1781_v26  ;;  %v1338_v45 = vld [vmem:[%s1771_s8 + $0x10] ss:$8 sps:$4 sm:$0xff]  }
 0x196   : > { %v1215_v24 = vpop.f32.mrb[26].mxu0  ;;  %1114 = vmatprep.subr.bf16.mxu1 %v641_v20  ;;  %v600_v29 = vadd.f32 %v1781_v26, %v599_v23 }
 0x197   : > { %v611_v27 = vadd.f32 %v1215_v24, %v1781_v26  ;;  %v602_v28 = vpop.f32.mrb[27].mxu0 }
 0x198   : > { %v603_v30 = vadd.f32 %v1781_v26, %v602_v28 }
 0x199   : > { %v643_v31 = vpack.c.bf16 %v611_v27, %v608_v25  ;;  %1115 = vmatpush3.bf16.msra.mxu1 %v633_v44  ;;  %v1336_v44 = vld [vmem:[%s1771_s8 + $0x14] ss:$8 sps:$4 sm:$0xff]  }
 0x19a   : > { %v642_v32 = vpack.c.bf16 %v603_v30, %v600_v29 }
 0x19c   : > { %v1218_v33 = vpop.f32.mrb[28].mxu0  ;;  %1116 = vmatprep.subr.bf16.mxu1 %v642_v32 }
 0x19d   : > { %v615_v34 = vpop.f32.mrb[29].mxu0  ;;  %1117 = vmatpush3.bf16.msra.mxu1 %v634_v55  ;;  %v624_v36 = vadd.f32 %v1218_v33, %v1781_v26  ;;  %v1354_v55 = vld [vmem:[%s1771_s8 + $0x74] ss:$8 sps:$4 sm:$0xff]  }
 0x19e   : > { %v1219_v35 = vpop.f32.mrb[30].mxu0  ;;  %1118 = vmatprep.subr.bf16.mxu1 %v643_v31  ;;  %v616_v39 = vadd.f32 %v1781_v26, %v615_v34 }
 0x19f   : > { %v627_v37 = vadd.f32 %v1219_v35, %v1781_v26  ;;  %v618_v38 = vpop.f32.mrb[31].mxu0 }
 0x1a0   : > { %v619_v40 = vadd.f32 %v1781_v26, %v618_v38  ;;  %v1339_v26 = vld [vmem:[%s1771_s8 + $0x24] ss:$8 sps:$4 sm:$0xff]  }
 0x1a1   : > { %v645_v41 = vpack.c.bf16 %v627_v37, %v624_v36  ;;  %1119 = vmatpush3.bf16.msra.mxu1 %v635_v54  ;;  %v1353_v54 = vld [vmem:[%s1771_s8 + $0x60] ss:$8 sps:$4 sm:$0xff]  }
 0x1a2   : > { %v644_v42 = vpack.c.bf16 %v619_v40, %v616_v39 }
 0x1a4   : > { %1120 = vmatprep.subr.bf16.mxu1 %v644_v42 }
 0x1a5   : > { %1121 = vmatpush3.bf16.msra.mxu1 %v636_v1 }
 0x1a6   : > { %1122 = vmatprep.subr.bf16.mxu1 %v645_v41 }
 0x1a9   : > { %1123 = vmatpush3.bf16.msra.mxu1 %v637_v0 }
 0x1ac   : > { %807 = vmatmul.mubr.bf16.vlgmr.msra.gmra.mrb[0].mxu1 %v1333_v43 }
 0x1ad   : > { %814 = vmatprep.mubr.bf16.mxu1 %v1336_v44 }
 0x1b4   : > { %815 = vmatmul.mubr.bf16.gmra.mrb[4].mxu1 %v1338_v45 }
 0x1b5   : > { %822 = vmatprep.mubr.bf16.mxu1 %v1339_v26 }
 0x1bc   : > { %823 = vmatmul.mubr.bf16.gmra.mrb[8].mxu1 %v1341_v46 }
 0x1bd   : > { %830 = vmatprep.mubr.bf16.mxu1 %v1342_v47 }
 0x1c4   : > { %831 = vmatmul.mubr.bf16.gmra.mrb[12].mxu1 %v1344_v48 }
 0x1c5   : > { %838 = vmatprep.mubr.bf16.mxu1 %v1345_v49 }
 0x1cc   : > { %839 = vmatmul.mubr.bf16.gmra.mrb[16].mxu1 %v1347_v50 }
 0x1cd   : > { %846 = vmatprep.mubr.bf16.mxu1 %v1348_v51 }
 0x1d4   : > { %847 = vmatmul.mubr.bf16.gmra.mrb[20].mxu1 %v1350_v52 }
 0x1d5   : > { %854 = vmatprep.mubr.bf16.mxu1 %v1351_v53 }
 0x1dc   : > { %855 = vmatmul.mubr.bf16.gmra.mrb[24].mxu1 %v1353_v54 }
 0x1dd   : > { %862 = vmatprep.mubr.bf16.mxu1 %v1354_v55 }
 0x1e4   : > { %863 = vmatmul.mubr.bf16.gmra.mrb[28].mxu1 %v1356_v56 }
 0x27f   : > { %v1124_v57 = vpop.f32.mrb[0].mxu1 }
 0x280   : > { %v1125_v58 = vpop.f32.mrb[1].mxu1 }
 0x281   : > { %v1126_v59 = vadd.f32 %v1125_v58, %v1124_v57  ;;  %v1127_v60 = vpop.f32.mrb[2].mxu1 }
 0x282   : > { %v1128_v61 = vpop.f32.mrb[3].mxu1 }
 0x283   : > { %v871_v62 = vmax.f32 %v1126_v59, 0.0  ;;  %v1129_v63 = vadd.f32 %v1128_v61, %v1127_v60 }
 0x285   : > { %887 = vst [vmem:[%s1843_s22] sm:$0xff] %v871_v62  ;;  %v872_v0 = vmax.f32 %v1129_v63, 0.0 }
 0x287   : > { %888 = vst [vmem:[%s1843_s22 + $0x8] sm:$0xff] %v872_v0  ;;  %v1130_v1 = vpop.f32.mrb[4].mxu1 }
 0x288   : > { %v1131_v2 = vpop.f32.mrb[5].mxu1 }
 0x289   : > { %v1132_v3 = vadd.f32 %v1131_v2, %v1130_v1  ;;  %v1133_v4 = vpop.f32.mrb[6].mxu1 }
 0x28a   : > { %v1134_v5 = vpop.f32.mrb[7].mxu1 }
 0x28b   : > { %v873_v6 = vmax.f32 %v1132_v3, 0.0  ;;  %v1135_v7 = vadd.f32 %v1134_v5, %v1133_v4 }
 0x28d   : > { %889 = vst [vmem:[%s1843_s22 + $0x10] sm:$0xff] %v873_v6  ;;  %v874_v8 = vmax.f32 %v1135_v7, 0.0 }
 0x28f   : > { %890 = vst [vmem:[%s1843_s22 + $0x18] sm:$0xff] %v874_v8  ;;  %v1136_v9 = vpop.f32.mrb[8].mxu1 }
 0x290   : > { %v1137_v10 = vpop.f32.mrb[9].mxu1 }
 0x291   : > { %v1138_v11 = vadd.f32 %v1137_v10, %v1136_v9  ;;  %v1139_v12 = vpop.f32.mrb[10].mxu1 }
 0x292   : > { %v1140_v13 = vpop.f32.mrb[11].mxu1 }
 0x293   : > { %v875_v14 = vmax.f32 %v1138_v11, 0.0  ;;  %v1141_v15 = vadd.f32 %v1140_v13, %v1139_v12 }
 0x295   : > { %891 = vst [vmem:[%s1843_s22 + $0x20] sm:$0xff] %v875_v14  ;;  %v876_v16 = vmax.f32 %v1141_v15, 0.0 }
 0x297   : > { %892 = vst [vmem:[%s1843_s22 + $0x28] sm:$0xff] %v876_v16  ;;  %v1142_v17 = vpop.f32.mrb[12].mxu1 }
 0x298   : > { %v1143_v18 = vpop.f32.mrb[13].mxu1 }
 0x299   : > { %v1144_v19 = vadd.f32 %v1143_v18, %v1142_v17  ;;  %v1145_v20 = vpop.f32.mrb[14].mxu1 }
 0x29a   : > { %v1146_v21 = vpop.f32.mrb[15].mxu1 }
 0x29b   : > { %v877_v22 = vmax.f32 %v1144_v19, 0.0  ;;  %v1147_v23 = vadd.f32 %v1146_v21, %v1145_v20 }
 0x29d   : > { %893 = vst [vmem:[%s1843_s22 + $0x30] sm:$0xff] %v877_v22  ;;  %v878_v24 = vmax.f32 %v1147_v23, 0.0 }
 0x29f   : > { %894 = vst [vmem:[%s1843_s22 + $0x38] sm:$0xff] %v878_v24  ;;  %v1148_v25 = vpop.f32.mrb[16].mxu1 }
 0x2a0   : > { %v1149_v27 = vpop.f32.mrb[17].mxu1 }
 0x2a1   : > { %v1150_v28 = vadd.f32 %v1149_v27, %v1148_v25  ;;  %v1151_v29 = vpop.f32.mrb[18].mxu1 }
 0x2a2   : > { %v1152_v30 = vpop.f32.mrb[19].mxu1 }
 0x2a3   : > { %v879_v31 = vmax.f32 %v1150_v28, 0.0  ;;  %v1153_v32 = vadd.f32 %v1152_v30, %v1151_v29 }
 0x2a5   : > { %895 = vst [vmem:[%s1843_s22 + $0x40] sm:$0xff] %v879_v31  ;;  %v880_v33 = vmax.f32 %v1153_v32, 0.0 }
 0x2a7   : > { %896 = vst [vmem:[%s1843_s22 + $0x48] sm:$0xff] %v880_v33  ;;  %v1154_v34 = vpop.f32.mrb[20].mxu1 }
 0x2a8   : > { %v1155_v35 = vpop.f32.mrb[21].mxu1 }
 0x2a9   : > { %v1156_v36 = vadd.f32 %v1155_v35, %v1154_v34  ;;  %v1157_v37 = vpop.f32.mrb[22].mxu1 }
 0x2aa   : > { %v1158_v38 = vpop.f32.mrb[23].mxu1 }
 0x2ab   : > { %v881_v39 = vmax.f32 %v1156_v36, 0.0  ;;  %v1159_v40 = vadd.f32 %v1158_v38, %v1157_v37 }
 0x2ad   : > { %897 = vst [vmem:[%s1843_s22 + $0x50] sm:$0xff] %v881_v39  ;;  %v882_v41 = vmax.f32 %v1159_v40, 0.0 }
 0x2af   : > { %898 = vst [vmem:[%s1843_s22 + $0x58] sm:$0xff] %v882_v41  ;;  %v1160_v42 = vpop.f32.mrb[24].mxu1 }
 0x2b0   : > { %v1161_v43 = vpop.f32.mrb[25].mxu1 }
 0x2b1   : > { %v1162_v44 = vadd.f32 %v1161_v43, %v1160_v42  ;;  %v1163_v45 = vpop.f32.mrb[26].mxu1 }
 0x2b2   : > { %v1164_v26 = vpop.f32.mrb[27].mxu1 }
 0x2b3   : > { %v883_v46 = vmax.f32 %v1162_v44, 0.0  ;;  %v1165_v47 = vadd.f32 %v1164_v26, %v1163_v45 }
 0x2b5   : > { %899 = vst [vmem:[%s1843_s22 + $0x60] sm:$0xff] %v883_v46  ;;  %v884_v48 = vmax.f32 %v1165_v47, 0.0 }
 0x2b7   : > { %900 = vst [vmem:[%s1843_s22 + $0x68] sm:$0xff] %v884_v48  ;;  %v1166_v49 = vpop.f32.mrb[28].mxu1 }
 0x2b8   : > { %v1167_v50 = vpop.f32.mrb[29].mxu1 }
 0x2b9   : > { %v1168_v51 = vadd.f32 %v1167_v50, %v1166_v49  ;;  %v1169_v52 = vpop.f32.mrb[30].mxu1 }
 0x2ba   : > { %v1170_v53 = vpop.f32.mrb[31].mxu1 }
 0x2bb   : > { %v885_v54 = vmax.f32 %v1168_v51, 0.0  ;;  %v1171_v55 = vadd.f32 %v1170_v53, %v1169_v52 }
 0x2bd   : > { %901 = vst [vmem:[%s1843_s22 + $0x70] sm:$0xff] %v885_v54  ;;  %v886_v56 = vmax.f32 %v1171_v55, 0.0 }
 0x2bf   : > { %902 = vst [vmem:[%s1843_s22 + $0x78] sm:$0xff] %v886_v56 }
 0x2c0   : > { %1456 = shalt.err (!%p1453_p1)
}
 0x2c1   : > { %s1457_s29 = scalar_lea.hbm %s1864_s23, 2048  ;;  %s1461_s8 = scalar_lea.hbm %s1923_s4, 4096 }
 0x2c2   : > { %p1458_p7 = scmp.ne.s32.totalorder %s1864_s23, %s1457_s29  ;;  %p1462_p4 = scmp.lt.u32.totalorder %s1864_s23, %s1923_s4 }
 0x2c3   : > { %p1463_p3 = scmp.lt.u32.totalorder %s1461_s8, %s1457_s29  ;;  %p1465_p2 = scmp.lt.u32.totalorder %s1457_s29, %s1864_s23 }
 0x2c4   : > { %p1459_p10 = pnand %p1458_p7, %p1939_p6 }
 0x2c5   : > { %p1464_p12 = por %p1463_p3, %p1462_p4 }
 0x2c6   : > { %p1460_p11 = pneg %p1459_p10 }
 0x2c7   : > { %p1466_p9 = por %p1465_p2, %p1464_p12 }
 0x2c9   : > { %p1467_p5 = pnand %p1466_p9, %p1460_p11 }
 0x2cb   : > { %1470 = shalt.err (!%p1467_p5)
}
 0x2cc   : > { %s1543_s22 = smov 128   ;;  %s1544_s13 = smov 8  }
 0x2cd   : > { %1230 = dma.vmem_to_hbm [thread:$0]  (%p1939_p6), %s1866_s7, 2048, %s1864_s23, %s1872_s30, %s1543_s22, %s1543_s22, %s1544_s13  }
 0x2ce PF: > { %s933_s9 = sand.u32 1, %s1513_s15   ;;  %p1940_p8 = scmp.ne.s32.totalorder %s1930_s26, 0 }
 0x2cf   : > { %p1941_p0 = scmp.ge.s32.totalorder %s1533_s20, 2  ;;  %s934_s11 = scalar_lea.sflag [#allocation5], %s933_s9 }
 0x2d1   : > { %p1244_p13 = pnand %p1941_p0, %p1940_p8 }
 0x2d3   : > { %1508 = dma.done.wait (!%p1244_p13), %s934_s11, 2048  }
 0x2d4   : > { %1510 = vsyncadd (!%p1244_p13), %s934_s11, 4294965248  ;;  %s19_s20 = sadd.s32 1, %s1533_s20   ;;  %s1942_s15 = smov %s1517_s16 }
 0x2d5   : > { %p16_p1 = scmp.ge.s32.totalorder %s19_s20, 4   ;;  %s1943_s16 = smov %s1521_s17 }
 0x2d6   : > { %s1944_s17 = smov %s1724_s6  ;;  %s1945_s18 = smov %s1529_s19 }
 0x2d7   : > { %s1946_s19 = smov %s1948_s10  ;;  %18 = sbr.rel (!%p16_p1) target bundleno = 6 (0x6), region = 92 }
 0x2de   :  { %939 = vsyncpa [#allocation4], 1 }
 0x2df   :  { %941 = vsyncpa [#allocation4 + $0x1], 1 }
 0x2e0   :  { %942 = vsyncpa [#allocation7], 1 }
 0x2e1   :  { %943 = vsyncpa [#allocation5], 1 }
 0x2e2   :  { %945 = vsyncpa [#allocation5 + $0x1], 1 }

</bundles_post_ra>
